<compile_context>
chip_gen: v6e
topology: v6e:2x2x1
jax: 0.10.0
libtpu: 0.0.40
codegen_flags: <defaults>
</compile_context>

<pallas_src>
import numpy as np
import jax
import jax.numpy as jnp
from jax.experimental import pallas as pl
from jax.experimental.pallas import tpu as pltpu

_LANES = 128
# Target bytes per block per array (input and output each).  6 MiB ~= 4096
# (.,128) f32 rows: double-buffered in+out is ~24 MiB, well under v7x's 64 MiB
# physical VMEM; we set vmem_limit_bytes explicitly so v5e's 16 MiB scoped
# default does not reject it.
_TARGET_BLOCK_BYTES = 6 * 1024 * 1024


def make_params():
    # Deterministic buffers, identical to the PyTorch __init__:
    #   weight = inverse(A.transpose(0, 1)),  bias = -[0, 0.5, 0.5]
    A = np.array([[0.299, 0.587, 0.114],
                  [-0.169, -0.331, 0.5],
                  [0.5, -0.419, -0.081]], dtype=np.float32)
    weight = np.linalg.inv(A.T.astype(np.float64)).astype(np.float32)
    bias = -np.array([0.0, 0.5, 0.5], dtype=np.float32)
    return weight, bias


def _make_kernel(weight, bias):
    # out[:, c] = sum_k x[:, k] * W[k, c] + fused_bias[c],
    # where fused_bias[c] = sum_k bias[k] * W[k, c]  (bias folded on the host).
    # Kept on the VPU as unrolled scalar-constant FMAs: a K=3 contraction on
    # the MXU would be pure waste for this HBM-bound op.
    w = [[float(weight[k, c]) for c in range(3)] for k in range(3)]
    fb = [float(np.dot(bias.astype(np.float64), weight[:, c].astype(np.float64)))
          for c in range(3)]

    def kernel(x_ref, o_ref):
        # x_ref / o_ref: (bn, 3, tile_r, L) VMEM blocks.  Compute the mix in
        # f32 regardless of storage dtype (bf16-safe), cast back on the store.
        x0 = x_ref[:, 0, :, :].astype(jnp.float32)
        x1 = x_ref[:, 1, :, :].astype(jnp.float32)
        x2 = x_ref[:, 2, :, :].astype(jnp.float32)
        o_ref[:, 0, :, :] = (w[0][0] * x0 + w[1][0] * x1 + w[2][0] * x2 + fb[0]).astype(o_ref.dtype)
        o_ref[:, 1, :, :] = (w[0][1] * x0 + w[1][1] * x1 + w[2][1] * x2 + fb[1]).astype(o_ref.dtype)
        o_ref[:, 2, :, :] = (w[0][2] * x0 + w[1][2] * x1 + w[2][2] * x2 + fb[2]).astype(o_ref.dtype)

    return kernel


def _round_up(x, m):
    return ((x + m - 1) // m) * m


def _cdiv(a, b):
    return (a + b - 1) // b


def _choose_tiles(N, R, L, itemsize):
    """Pick (bn, tile_r) for a (N, 3, R, L) tensor.

    tile_r is a multiple of 8 or the full R (layout rule); tiles are balanced
    so the last grid step is not a tiny masked remainder, and when legal the
    grid gets >= 2 steps so v7x's second TensorCore is not idle.
    """
    row_bytes = 3 * L * itemsize
    target_r = max(1, _TARGET_BLOCK_BYTES // row_bytes)

    if R <= target_r:
        tile_r = R
        # Batch several images per block to amortize the ~0.35us/step overhead,
        # balanced so N % bn leaves no tiny remainder step.
        bn = min(N, max(1, target_r // max(R, 1)))
        bn = _cdiv(N, _cdiv(N, bn))
    else:
        # Balanced row tiling: equal-ish full-width tiles instead of
        # target-size tiles followed by a small masked tail.
        n_steps = _cdiv(R, target_r)
        tile_r = min(R, _round_up(_cdiv(R, n_steps), 8))
        bn = 1

    # Megacore: guarantee >= 2 grid steps whenever a legal split exists.
    if _cdiv(N, bn) * _cdiv(R, tile_r) == 1:
        if bn > 1:
            bn = _cdiv(bn, 2)
        elif R > 8:
            tile_r = _round_up(_cdiv(R, 2), 8)
    return bn, tile_r


def _run_planes(x4d):
    """Apply the color transform to a (N, 3, R, L) tensor, blocked over N and R."""
    N, C, R, L = x4d.shape
    itemsize = jnp.dtype(x4d.dtype).itemsize
    weight, bias = make_params()

    bn, tile_r = _choose_tiles(N, R, L, itemsize)
    grid_n = _cdiv(N, bn)
    grid_r = _cdiv(R, tile_r)
    block = (bn, 3, tile_r, L)

    # Larger parallel extent first (megacore sharding); both axes "parallel".
    if grid_r >= grid_n:
        grid = (grid_r, grid_n)
        index_map = lambda r, n: (n, 0, r, 0)
    else:
        grid = (grid_n, grid_r)
        index_map = lambda n, r: (n, 0, r, 0)

    # Explicit scoped-VMEM budget: 2x double-buffered (in + out) + headroom.
    block_bytes = bn * 3 * tile_r * L * itemsize
    vmem_limit = min(64 << 20, 2 * 2 * block_bytes + (8 << 20))

    n_px = N * R * L
    cost = pl.CostEstimate(flops=18 * n_px, transcendentals=0,
                           bytes_accessed=2 * 3 * n_px * itemsize)

    return pl.pallas_call(
        _make_kernel(weight, bias),
        out_shape=jax.ShapeDtypeStruct((N, 3, R, L), x4d.dtype),
        grid=grid,
        in_specs=[pl.BlockSpec(block, index_map)],
        out_specs=pl.BlockSpec(block, index_map),
        compiler_params=pltpu.CompilerParams(
            dimension_semantics=("parallel", "parallel"),
            vmem_limit_bytes=vmem_limit),
        cost_estimate=cost,
    )(x4d)


def ycbcr_to_rgb(im):
    N, C, H, W = im.shape
    assert C == 3
    hw = H * W
    if hw % _LANES == 0:
        # Lane-dense path: view each channel plane as (rows, 128) tiles.
        # Contiguous reshape -> no data movement, unmasked vld/vst.
        rows = hw // _LANES
        out = _run_planes(im.reshape(N, 3, rows, _LANES))
        return out.reshape(N, 3, H, W)
    # Ragged path (H*W not a multiple of 128): tile NCHW directly with the
    # last block dim equal to the full W.  Masked stores on a non-128 W are far
    # cheaper than the pad + slice extra HBM round trips of the old path.
    return _run_planes(im)


def _reference(im):
    # Pure-JAX reference mirroring the PyTorch forward.
    weight, bias = make_params()
    weight = jnp.asarray(weight)
    bias = jnp.asarray(bias)
    N, C, H, W = im.shape
    temp = jnp.transpose(im, (0, 2, 3, 1)).reshape(-1, 3)
    res = (temp + bias[None, :]) @ weight
    return jnp.transpose(res.reshape(N, H, W, 3), (0, 3, 1, 2))


if __name__ == "__main__":
    key = jax.random.PRNGKey(0)
    k1, k2 = jax.random.split(key)

    # Primary small test (lane-dense path, batched blocks, megacore split).
    im = jax.random.uniform(key, (2, 3, 16, 16), dtype=jnp.float32)
    out = jax.block_until_ready(ycbcr_to_rgb(im))
    ref = jax.block_until_ready(_reference(im))
    assert out.shape == (2, 3, 16, 16)
    np.testing.assert_allclose(np.asarray(out), np.asarray(ref), rtol=1e-5, atol=1e-5)

    # Lane-dense path with a partial (masked) last row tile: rows=12 -> 8 + 4.
    im2 = jax.random.uniform(k1, (1, 3, 48, 32), dtype=jnp.float32)
    out2 = jax.block_until_ready(ycbcr_to_rgb(im2))
    np.testing.assert_allclose(np.asarray(out2), np.asarray(_reference(im2)),
                               rtol=1e-5, atol=1e-5)

    # Ragged path: H*W not a multiple of 128 (no pad/slice, masked lane stores)
    # plus a partial batch block (N=3, bn=2).
    im3 = jax.random.uniform(k2, (3, 3, 15, 17), dtype=jnp.float32)
    out3 = jax.block_until_ready(ycbcr_to_rgb(im3))
    np.testing.assert_allclose(np.asarray(out3), np.asarray(_reference(im3)),
                               rtol=1e-5, atol=1e-5)

    print("KERNEL_OK")
</pallas_src>

<mosaic_0001>
module attributes {stable_mosaic.version = 11 : i64} {
  func.func @kernel(%arg0: i32, %arg1: i32, %arg2: memref<1x3x2x128xf32, #tpu.memory_space<vmem>>, %arg3: memref<1x3x2x128xf32, #tpu.memory_space<vmem>>) attributes {dimension_semantics = [#tpu.dimension_semantics<parallel>, #tpu.dimension_semantics<parallel>], iteration_bounds = array<i64: 2, 1>, scalar_prefetch = 0 : i64, scratch_operands = 0 : i64, tpu.core_type = #tpu.core_type<tc>, window_params = [{transform_indices = @transform_0, window_bounds = array<i64: 1, 3, 2, 128>}, {transform_indices = @transform_1, window_bounds = array<i64: 1, 3, 2, 128>}]} {
    %c0 = arith.constant 0 : index
    %c0_0 = arith.constant 0 : index
    %c0_1 = arith.constant 0 : index
    %c0_2 = arith.constant 0 : index
    %0 = vector.load %arg2[%c0, %c0_0, %c0_1, %c0_2] : memref<1x3x2x128xf32, #tpu.memory_space<vmem>>, vector<1x1x2x128xf32>
    %1 = vector.shape_cast %0 : vector<1x1x2x128xf32> to vector<1x2x128xf32>
    %c0_3 = arith.constant 0 : index
    %c1 = arith.constant 1 : index
    %c0_4 = arith.constant 0 : index
    %c0_5 = arith.constant 0 : index
    %2 = vector.load %arg2[%c0_3, %c1, %c0_4, %c0_5] : memref<1x3x2x128xf32, #tpu.memory_space<vmem>>, vector<1x1x2x128xf32>
    %3 = vector.shape_cast %2 : vector<1x1x2x128xf32> to vector<1x2x128xf32>
    %c0_6 = arith.constant 0 : index
    %c2 = arith.constant 2 : index
    %c0_7 = arith.constant 0 : index
    %c0_8 = arith.constant 0 : index
    %4 = vector.load %arg2[%c0_6, %c2, %c0_7, %c0_8] : memref<1x3x2x128xf32, #tpu.memory_space<vmem>>, vector<1x1x2x128xf32>
    %5 = vector.shape_cast %4 : vector<1x1x2x128xf32> to vector<1x2x128xf32>
    %cst = arith.constant 1.000000e+00 : f32
    %6 = vector.broadcast %cst : f32 to vector<1x2x128xf32>
    %7 = arith.mulf %6, %1 : vector<1x2x128xf32>
    %cst_9 = arith.constant -9.267400e-04 : f32
    %8 = vector.broadcast %cst_9 : f32 to vector<1x2x128xf32>
    %9 = arith.mulf %8, %3 : vector<1x2x128xf32>
    %10 = arith.addf %7, %9 : vector<1x2x128xf32>
    %cst_10 = arith.constant 1.40168679 : f32
    %11 = vector.broadcast %cst_10 : f32 to vector<1x2x128xf32>
    %12 = arith.mulf %11, %5 : vector<1x2x128xf32>
    %13 = arith.addf %10, %12 : vector<1x2x128xf32>
    %cst_11 = arith.constant -7.003800e-01 : f32
    %14 = vector.broadcast %cst_11 : f32 to vector<1x2x128xf32>
    %15 = arith.addf %13, %14 : vector<1x2x128xf32>
    %c0_12 = arith.constant 0 : index
    %c0_13 = arith.constant 0 : index
    %c0_14 = arith.constant 0 : index
    %c0_15 = arith.constant 0 : index
    %16 = vector.load %arg3[%c0_12, %c0_13, %c0_14, %c0_15] : memref<1x3x2x128xf32, #tpu.memory_space<vmem>>, vector<1x1x2x128xf32>
    %17 = vector.shape_cast %16 : vector<1x1x2x128xf32> to vector<1x2x128xf32>
    %18 = vector.shape_cast %15 : vector<1x2x128xf32> to vector<1x1x2x128xf32>
    tpu.vector_store %arg3[%c0_12, %c0_13, %c0_14, %c0_15], %18 {strides = array<i32>} : memref<1x3x2x128xf32, #tpu.memory_space<vmem>>, vector<1x1x2x128xf32>,
    %cst_16 = arith.constant 1.000000e+00 : f32
    %19 = vector.broadcast %cst_16 : f32 to vector<1x2x128xf32>
    %20 = arith.mulf %19, %1 : vector<1x2x128xf32>
    %cst_17 = arith.constant -0.343695372 : f32
    %21 = vector.broadcast %cst_17 : f32 to vector<1x2x128xf32>
    %22 = arith.mulf %21, %3 : vector<1x2x128xf32>
    %23 = arith.addf %20, %22 : vector<1x2x128xf32>
    %cst_18 = arith.constant -7.141690e-01 : f32
    %24 = vector.broadcast %cst_18 : f32 to vector<1x2x128xf32>
    %25 = arith.mulf %24, %5 : vector<1x2x128xf32>
    %26 = arith.addf %23, %25 : vector<1x2x128xf32>
    %cst_19 = arith.constant 0.528932214 : f32
    %27 = vector.broadcast %cst_19 : f32 to vector<1x2x128xf32>
    %28 = arith.addf %26, %27 : vector<1x2x128xf32>
    %c0_20 = arith.constant 0 : index
    %c1_21 = arith.constant 1 : index
    %c0_22 = arith.constant 0 : index
    %c0_23 = arith.constant 0 : index
    %29 = vector.load %arg3[%c0_20, %c1_21, %c0_22, %c0_23] : memref<1x3x2x128xf32, #tpu.memory_space<vmem>>, vector<1x1x2x128xf32>
    %30 = vector.shape_cast %29 : vector<1x1x2x128xf32> to vector<1x2x128xf32>
    %31 = vector.shape_cast %28 : vector<1x2x128xf32> to vector<1x1x2x128xf32>
    tpu.vector_store %arg3[%c0_20, %c1_21, %c0_22, %c0_23], %31 {strides = array<i32>} : memref<1x3x2x128xf32, #tpu.memory_space<vmem>>, vector<1x1x2x128xf32>,
    %cst_24 = arith.constant 1.000000e+00 : f32
    %32 = vector.broadcast %cst_24 : f32 to vector<1x2x128xf32>
    %33 = arith.mulf %32, %1 : vector<1x2x128xf32>
    %cst_25 = arith.constant 1.77216041 : f32
    %34 = vector.broadcast %cst_25 : f32 to vector<1x2x128xf32>
    %35 = arith.mulf %34, %3 : vector<1x2x128xf32>
    %36 = arith.addf %33, %35 : vector<1x2x128xf32>
    %cst_26 = arith.constant 9.90235479E-4 : f32
    %37 = vector.broadcast %cst_26 : f32 to vector<1x2x128xf32>
    %38 = arith.mulf %37, %5 : vector<1x2x128xf32>
    %39 = arith.addf %36, %38 : vector<1x2x128xf32>
    %cst_27 = arith.constant -0.886575341 : f32
    %40 = vector.broadcast %cst_27 : f32 to vector<1x2x128xf32>
    %41 = arith.addf %39, %40 : vector<1x2x128xf32>
    %c0_28 = arith.constant 0 : index
    %c2_29 = arith.constant 2 : index
    %c0_30 = arith.constant 0 : index
    %c0_31 = arith.constant 0 : index
    %42 = vector.load %arg3[%c0_28, %c2_29, %c0_30, %c0_31] : memref<1x3x2x128xf32, #tpu.memory_space<vmem>>, vector<1x1x2x128xf32>
    %43 = vector.shape_cast %42 : vector<1x1x2x128xf32> to vector<1x2x128xf32>
    %44 = vector.shape_cast %41 : vector<1x2x128xf32> to vector<1x1x2x128xf32>
    tpu.vector_store %arg3[%c0_28, %c2_29, %c0_30, %c0_31], %44 {strides = array<i32>} : memref<1x3x2x128xf32, #tpu.memory_space<vmem>>, vector<1x1x2x128xf32>,
    return
  }
  func.func @transform_0(%arg0: i32, %arg1: i32) -> (i32, i32, i32, i32) {
    %c0_i32 = arith.constant 0 : i32
    %c0_i32_0 = arith.constant 0 : i32
    %c0_i32_1 = arith.constant 0 : i32
    return %arg0, %c0_i32, %arg1, %c0_i32_0 : i32, i32, i32, i32
  }
  func.func @transform_1(%arg0: i32, %arg1: i32) -> (i32, i32, i32, i32) {
    %c0_i32 = arith.constant 0 : i32
    %c0_i32_0 = arith.constant 0 : i32
    %c0_i32_1 = arith.constant 0 : i32
    return %arg0, %c0_i32, %arg1, %c0_i32_0 : i32, i32, i32, i32
  }
}

</mosaic_0001>

<bundles_post_ra>
// kernel: tpu_custom_call.1
= control target key start
LH: loop header
LB: loop body
LE: loop exit
PB: predicated region body
PF: predicated region fallthrough
CT: control target
= control target key end

     0   :  { %6 = vsyncpa [#allocation3], 0  ;;  %s632_s0 = inlined_call_operand.hbm [shape: f32[2,3,2,128], index: 0, kind: input, shape index: {}]   ;;  %s633_s1 = inlined_call_operand.hbm [shape: f32[2,3,2,128], index: 1, kind: output, shape index: {}]  }
   0x1   :  { %8 = vsyncpa [#allocation3 + $0x1], 0 }
   0x2   :  { %9 = vsyncpa [#allocation4], 0 }
   0x3   :  { %11 = vsyncpa [#allocation4 + $0x1], 0  ;;  %s486_s6 = smov 0   ;;  %s488_s7 = smov 0  }
   0x4   :  { %s490_s8 = smov 0   ;;  %s492_s9 = smov 0  }
   0x5   :  { %s494_s10 = smov 0   ;;  %s496_s11 = smov 0  }
   0x6 LB: > { %s277_s12 = sadd.s32 4294967295, %s468_s11   ;;  %s278_s13 = sadd.s32 4294967294, %s468_s11   ;;  %s468_s11 = sphi %s496_s11, %s17_s11   ;;  %s464_s10 = sphi %s494_s10, %s644_s10   ;;  %s460_s9 = sphi %s492_s9, %s643_s9   ;;  %s456_s8 = sphi %s490_s8, %s642_s8   ;;  %s452_s7 = sphi %s488_s7, %s641_s7   ;;  %s448_s6 = sphi %s486_s6, %s640_s6  }
   0x7   : > { %s29_s14 = sadd.s32 1, %s464_s10  ;;  %s38_s15 = sadd.s32 1, %s456_s8 }
   0x8   : > { %p31_p0 = scmp.ge.s32.totalorder %s29_s14, 2  ;;  %p45_p1 = scmp.ne.s32.totalorder %s456_s8, %s452_s7 }
   0x9   : > { %p46_p2 = scmp.eq.s32.totalorder %s468_s11, 0  ;;  %p51_p3 = scmp.ne.s32.totalorder %s452_s7, %s448_s6 }
   0xa   : > { %s646_s14 = smov (%p31_p0, %s29_s14), 0  ;;  %p52_p5 = scmp.eq.s32.totalorder %s277_s12, 0 }
   0xb   : > { %p527_p4 = por %p46_p2, %p45_p1  ;;  %s33_s17 = ssub.s32 %s464_s10, %s646_s14 }
   0xc   : > { %p77_p6 = scmp.eq.s32.totalorder %s277_s12, 1  ;;  %p36_p7 = scmp.eq.s32.totalorder %s33_s17, 0 }
   0xd   : > { %p533_p8 = por %p52_p5, %p51_p3  ;;  %p83_p10 = scmp.eq.s32.totalorder %s278_s13, 1 }
   0xe   : > { %p537_p9 = por %p77_p6, %p45_p1  ;;  %p306_p13 = scmp.lt.s32.totalorder %s468_s11, 2 }
   0xf   : > { %s542_s20 = scalar_select %p36_p7, %s456_s8, %s38_s15  }
  0x10   : > { %p544_p11 = por %p83_p10, %p51_p3  ;;  %s103_s22 = sand.u32 1, %s456_s8  }
  0x11   : > { %s290_s23 = smul.u32 6, %s103_s22  ;;  %p554_p0 = pnand %p306_p13, %p527_p4 }
  0x12   : > { %s291_s24 = smul.u32 96, %s464_s10  ;;  %p282_p1 = scmp.ge.s32.totalorder %s468_s11, 1 }
  0x13   : > { %s107_s29 = scalar_lea.vmem [#allocation2], %s290_s23  ;;  %s104_s2 = scalar_lea.sflag [#allocation3], %s103_s22 }
  0x14   : > { %s114_s28 = scalar_lea.hbm %s632_s0, %s291_s24  ;;  %s115_s30 = sshll.u32 %s107_s29, 4  ;;  %s116_s30 = int_to_ptr.vmem [resolvable:$true] %s115_s30 }
  0x15   : > { %p362_p2 = pneg %p554_p0  ;;  %s373_s3 = scalar_lea.vmem %s116_s30, 96 }
  0x16   : > { %p374_p3 = scmp.ne.s32.totalorder %s116_s30, %s373_s3  ;;  %s470_s4 = smov [#allocation2]  }
  0x17   : > { %s378_s5 = sshll.u32 %s470_s4, 4  ;;  %s379_s5 = int_to_ptr.vmem [resolvable:$false] %s378_s5 }
  0x18   : > { %p376_p5 = pnand %p374_p3, %p362_p2  ;;  %s380_s12 = scalar_lea.vmem %s379_s5, 192 }
  0x19   : > { %p381_p4 = scmp.lt.s32.totalorder %s116_s30, %s379_s5  ;;  %p382_p7 = scmp.lt.s32.totalorder %s380_s12, %s373_s3 }
  0x1a   : > { %p377_p6 = pneg %p376_p5 }
  0x1b   : > { %p383_p10 = por %p382_p7, %p381_p4 }
  0x1d   : > { %p384_p13 = pnand %p383_p10, %p377_p6 }
  0x1f   : > { %387 = shalt.err (!%p384_p13)
}
  0x20   : > { %s471_s13 = smov 32   ;;  %s472_s15 = smov 2  }
  0x21   : > { %301 = dma.hbm_to_vmem [thread:$0]  (!%p554_p0), %s114_s28, 96, %s116_s30, %s104_s2, %s471_s13, %s471_s13, %s472_s15  }
  0x22   : > { %p123_p12 = scmp.lt.s32.totalorder %s468_s11, 3 }
  0x24   : > { %p124_p2 = pnand %p282_p1, %p123_p12 }
  0x25   : > { %s570_s16 = sand.u32 (!%p124_p2), 1, %s452_s7  }
  0x26   : > { %127 = sbr.rel (%p124_p2) target bundleno = 72 (0x48), region = 24  ;;  %s130_s22 = scalar_lea.sflag (!%p124_p2), [#allocation3], %s570_s16 }
  0x27   : > { %s292_s17 = smul.u32 (!%p124_p2), 6, %s570_s16 }
  0x29   : > { %s133_s23 = scalar_lea.vmem (!%p124_p2), [#allocation2], %s292_s17 }
  0x2b   : > { %439 = dma.done.wait (%p533_p8), %s130_s22, 96  }
  0x2c   : > { %441 = vsyncadd (%p533_p8), %s130_s22, 4294967200  ;;  %v152_v0 = vld [vmem:[%s133_s23] sm:$0x3]  ;;  %v283_v1 = vld [vmem:[%s133_s23 + $0x2] sm:$0x3]  ;;  %s151_s24 = scalar_lea.vmem [#allocation5], %s292_s17 }
  0x2d   : > { %v284_v2 = vld [vmem:[%s133_s23 + $0x4] sm:$0x3]  ;;  %v157_v3 = vmul.f32 -0.00092674, %v283_v1  ;;  %v163_v5 = vmul.f32 -0.34369537, %v283_v1 }
  0x2e   : > { %v159_v4 = vmul.f32 1.4016868, %v284_v2  ;;  %v165_v6 = vmul.f32 -0.714169, %v284_v2  ;;  %v170_v7 = vmul.f32 1.7721604, %v283_v1 }
  0x2f   : > { %v172_v8 = vmul.f32 0.0009902355, %v284_v2  ;;  %v158_v9 = vadd.f32 %v157_v3, %v152_v0  ;;  %v164_v10 = vadd.f32 %v163_v5, %v152_v0  ;;  %s192_s25 = sshll.u32 %s151_s24, 4  ;;  %s293_s26 = smul.u32 96, %s460_s9  ;;  %s579_s25 = int_to_ptr.vmem [resolvable:$true] %s192_s25 }
  0x30   : > { %v171_v11 = vadd.f32 %v170_v7, %v152_v0  ;;  %s178_s9 = scalar_lea.sflag [#allocation4], %s570_s16  ;;  %s388_s29 = scalar_lea.vmem %s579_s25, 96 }
  0x31   : > { %v160_v12 = vadd.f32 %v159_v4, %v158_v9  ;;  %v166_v13 = vadd.f32 %v165_v6, %v164_v10  ;;  %s584_s28 = scalar_lea.hbm %s633_s1, %s293_s26  ;;  %p389_p8 = scmp.ne.s32.totalorder %s579_s25, %s388_s29 }
  0x32   : > { %v173_v14 = vadd.f32 %v172_v8, %v171_v11  ;;  %s473_s30 = smov [#allocation5]  }
  0x33   : > { %v161_v15 = vadd.f32 -0.70038, %v160_v12  ;;  %v167_v16 = vadd.f32 0.5289322, %v166_v13  ;;  %p390_p12 = pnand %p389_p8, %p537_p9  ;;  %s392_s2 = sshll.u32 %s473_s30, 4  ;;  %s393_s2 = int_to_ptr.vmem [resolvable:$false] %s392_s2 }
  0x34   : > { %v174_v17 = vadd.f32 -0.88657534, %v173_v14  ;;  %s394_s3 = scalar_lea.vmem %s393_s2, 192  ;;  %p395_p1 = scmp.lt.s32.totalorder %s579_s25, %s393_s2 }
  0x35   : > { %162 = vst [vmem:[%s151_s24] sm:$0x3] %v161_v15  ;;  %285 = vst [vmem:[%s151_s24 + $0x2] sm:$0x3] %v167_v16  ;;  %p391_p0 = pneg %p390_p12  ;;  %p396_p3 = scmp.lt.s32.totalorder %s394_s3, %s388_s29 }
  0x36   : > { %286 = vst [vmem:[%s151_s24 + $0x4] sm:$0x3] %v174_v17 }
  0x37   : > { %p397_p5 = por %p396_p3, %p395_p1 }
  0x39   : > { %p398_p6 = pnand %p397_p5, %p391_p0 }
  0x3b   : > { %401 = shalt.err (!%p398_p6)
}
  0x3c   : > { %s402_s4 = scalar_lea.hbm %s584_s28, 96  ;;  %s406_s13 = scalar_lea.hbm %s633_s1, 192 }
  0x3d   : > { %p403_p4 = scmp.ne.s32.totalorder %s584_s28, %s402_s4  ;;  %p407_p13 = scmp.lt.s32.totalorder %s584_s28, %s633_s1 }
  0x3e   : > { %p408_p2 = scmp.lt.s32.totalorder %s406_s13, %s402_s4 }
  0x3f   : > { %p404_p7 = pnand %p403_p4, %p537_p9 }
  0x40   : > { %p409_p8 = por %p408_p2, %p407_p13 }
  0x41   : > { %p405_p10 = pneg %p404_p7 }
  0x43   : > { %p410_p12 = pnand %p409_p8, %p405_p10 }
  0x45   : > { %413 = shalt.err (!%p410_p12)
}
  0x46   : > { %s474_s22 = smov 32   ;;  %s475_s23 = smov 2  }
  0x47   : > { %296 = dma.vmem_to_hbm [thread:$0]  (%p537_p9), %s579_s25, 96, %s584_s28, %s178_s9, %s474_s22, %s474_s22, %s475_s23  }
  0x48 PF: > { %s207_s24 = sand.u32 1, %s448_s6   ;;  %p639_p0 = scmp.ge.s32.totalorder %s468_s11, 2 }
  0x49   : > { %s208_s26 = scalar_lea.sflag [#allocation4], %s207_s24 }
  0x4a   : > { %p303_p1 = pnand %p639_p0, %p544_p11 }
  0x4c   : > { %p304_p3 = pneg %p303_p1 }
  0x4e   : > { %443 = dma.done.wait (%p304_p3), %s208_s26, 96  }
  0x4f   : > { %445 = vsyncadd (%p304_p3), %s208_s26, 4294967200  ;;  %s17_s11 = sadd.s32 1, %s468_s11   ;;  %s640_s6 = smov %s452_s7 }
  0x50   : > { %p14_p5 = scmp.ge.s32.totalorder %s17_s11, 4   ;;  %s641_s7 = smov %s456_s8 }
  0x51   : > { %s642_s8 = smov %s542_s20  ;;  %s643_s9 = smov %s464_s10 }
  0x52   : > { %s644_s10 = smov %s646_s14  ;;  %16 = sbr.rel (!%p14_p5) target bundleno = 6 (0x6), region = 73 }
  0x57   :  { %213 = vsyncpa [#allocation3], 1 }
  0x58   :  { %215 = vsyncpa [#allocation3 + $0x1], 1 }
  0x59   :  { %216 = vsyncpa [#allocation4], 1 }
  0x5a   :  { %218 = vsyncpa [#allocation4 + $0x1], 1 }

</bundles_post_ra>
